<compile_context>
chip_gen: v7x
topology: tpu7x:2x2x1
jax: 0.10.0
libtpu: 0.0.40
codegen_flags: <defaults>
</compile_context>

<pallas_src>
import math

import jax
import jax.numpy as jnp
from jax.experimental import pallas as pl
from jax.experimental.pallas import tpu as pltpu


# ----------------------------------------------------------------------------
# Fused Pallas kernel
# ----------------------------------------------------------------------------
def _llm_fused_kernel(feats_ref, sm_ref, gfore_ref, gback_ref, out_ref):
    """One (batch, HW-tile) block: masks + fore/back cosine attention + combine."""
    feats = feats_ref[0]                              # (C, T)  f32
    sm = sm_ref[0]                                    # (2, T)  f32
    bg_soft = sm[0:1, :]                              # (1, T)
    fg_soft = sm[1:2, :]                              # (1, T)
    # hard mask = argmax over the 2 channels (tie -> background, like argmax).
    fg_hard = (fg_soft > bg_soft).astype(jnp.float32)
    bg_hard = 1.0 - fg_hard

    def att_max(gated, masked):
        # gated: (K, C) gated prototypes; masked: (C, T) masked feats.
        sumsq_p = jnp.sum(gated * gated, axis=1, keepdims=True)      # (K, 1)
        sumsq_f = jnp.sum(masked * masked, axis=0, keepdims=True)    # (1, T)
        norm = jnp.sqrt(sumsq_p) * jnp.sqrt(sumsq_f)                 # (K, T)
        # bf16 MXU matmul, f32 accumulation (elementwise math stays f32).
        att = jnp.dot(gated.astype(jnp.bfloat16),
                      masked.astype(jnp.bfloat16),
                      preferred_element_type=jnp.float32)            # (K, T)
        # divide -> EUP reciprocal (eps placement matches the torch module).
        att = jnp.maximum(att * pl.reciprocal(norm + 1e-8, approx=True), 0.0)
        return jnp.max(att, axis=0, keepdims=True)                   # (1, T)

    fore_att = att_max(gfore_ref[0], feats * bg_hard)                # (1, T)
    back_att = att_max(gback_ref[0], feats * fg_hard)                # (1, T)

    mod = fg_soft - back_att + fore_att                              # (1, T)
    out_ref[0] = feats * (1.0 + mod)                                 # (C, T)


# ----------------------------------------------------------------------------
# Plain-JAX glue: top-k gather + Binary_Gate_Unit gating MLP (batched, tiny)
# ----------------------------------------------------------------------------
def _bgu_gate(protos, p):
    """Binary_Gate_Unit: 1x1 conv (C->1, no bias) + ReLU, fc1, fc2, gate."""
    s = jnp.maximum(jnp.einsum("bkc,c->bk", protos, p["conv_w"]), 0.0)   # (B, K)
    h1 = s @ p["w1"] + p["b1"]          # torch does fc1(relu(x)); relu(relu(x)) == relu(x)
    h2 = h1 @ p["w2"] + p["b2"]
    # TODO(synk): Gumbel(config) is not provided with the module; use the
    # deterministic sigmoid gate (eval-mode Gumbel-sigmoid, no noise).
    return jax.nn.sigmoid(h2)                                            # (B, K)


def _gated_prototypes(feats_flat, score, p, k):
    """score: (B, HW) -> gated top-k prototypes (B, K, C)."""
    _, idx = jax.lax.top_k(score, k)                                     # (B, K)
    protos = jnp.transpose(
        jnp.take_along_axis(feats_flat, idx[:, None, :], axis=2), (0, 2, 1))  # (B, K, C)
    gate = _bgu_gate(protos, p)                                          # (B, K)
    return protos * gate[:, :, None]


def _pick_hw_tile(hw, cap=2048):
    """Largest multiple-of-128 divisor of hw that is <= cap, else the full row.

    cap=2048 keeps the double-buffered (C, tile) f32 blocks comfortably inside
    v7x's 64 MiB VMEM even at large C, while staying lane-dense (>= 128).
    """
    if hw <= cap:
        return hw
    for t in range(cap, 127, -128):
        if hw % t == 0:
            return t
    return hw


# ----------------------------------------------------------------------------
# Public forward pass
# ----------------------------------------------------------------------------
def lesion_location_mining(feats, soft_mask, params, k):
    """feats: (B, C, H, W) NCHW; soft_mask: (B, 2, H, W) (bg, fg). -> (B, C, H, W)."""
    b, c, h, w = feats.shape
    assert soft_mask.shape == (b, 2, h, w)
    hw = h * w
    feats_flat = feats.reshape(b, c, hw)
    sm_flat = soft_mask.reshape(b, 2, hw)

    # Gating MLP hoisted out of the kernel: tiny matmuls, batched over B.
    gated_fore = _gated_prototypes(feats_flat, sm_flat[:, 1, :], params["fore"], k)
    gated_back = _gated_prototypes(feats_flat, sm_flat[:, 0, :], params["back"], k)

    t = _pick_hw_tile(hw)
    out = pl.pallas_call(
        _llm_fused_kernel,
        out_shape=jax.ShapeDtypeStruct((b, c, hw), jnp.float32),
        grid_spec=pltpu.PrefetchScalarGridSpec(
            num_scalar_prefetch=0,
            grid=(b, hw // t),
            in_specs=[
                pl.BlockSpec((1, c, t), lambda i, j: (i, 0, j)),   # feats tile
                pl.BlockSpec((1, 2, t), lambda i, j: (i, 0, j)),   # soft mask tile
                pl.BlockSpec((1, k, c), lambda i, j: (i, 0, 0)),   # gated fore protos
                pl.BlockSpec((1, k, c), lambda i, j: (i, 0, 0)),   # gated back protos
            ],
            out_specs=pl.BlockSpec((1, c, t), lambda i, j: (i, 0, j)),
        ),
        # Output reuses the feats buffer (free when the caller donates feats).
        input_output_aliases={0: 0},
        compiler_params=pltpu.CompilerParams(
            dimension_semantics=("parallel", "parallel")),
    )(feats_flat, sm_flat, gated_fore, gated_back)
    return out.reshape(b, c, h, w)


def init_bgu_params(key, c, k):
    m = int(math.ceil(k / 2))
    k1, k2, k3, k4, k5 = jax.random.split(key, 5)
    return dict(
        conv_w=jax.random.normal(k1, (c,), jnp.float32) * 0.05,           # 1x1 conv C->1
        w1=jax.random.normal(k2, (k, m), jnp.float32) / math.sqrt(k),      # fc1 (transposed)
        b1=jax.random.normal(k3, (m,), jnp.float32) * 0.01,
        w2=jax.random.normal(k4, (m, k), jnp.float32) / math.sqrt(m),      # fc2 (transposed)
        b2=jax.random.normal(k5, (k,), jnp.float32) * 0.01,
    )


# ----------------------------------------------------------------------------
# Pure-JAX reference (same semantics, f32 everywhere) for the sanity check
# ----------------------------------------------------------------------------
def _ref_forward(feats, soft_mask, params, k):
    b, c, h, w = feats.shape
    hw = h * w
    feats_flat = feats.reshape(b, c, hw)
    sm = soft_mask.reshape(b, 2, hw)
    hard = jnp.argmax(sm, axis=1)[:, None, :]               # (B, 1, HW)
    bg_hard = (hard == 0).astype(feats.dtype)
    fg_hard = (hard == 1).astype(feats.dtype)
    bg_soft = sm[:, 0:1, :]
    fg_soft = sm[:, 1:2, :]
    fg_feats = feats_flat * fg_hard
    bg_feats = feats_flat * bg_hard

    def att(score, masked, p):
        _, idx = jax.lax.top_k(score, k)
        protos = jnp.transpose(
            jnp.take_along_axis(feats_flat, idx[:, None, :], axis=2), (0, 2, 1))
        gated = protos * _bgu_gate(protos, p)[:, :, None]
        norm_p = jnp.linalg.norm(gated, axis=-1, keepdims=True)      # (B, K, 1)
        norm_f = jnp.linalg.norm(masked, axis=1, keepdims=True)      # (B, 1, HW)
        a = jnp.einsum("bkc,bcn->bkn", gated, masked)
        a = jnp.maximum(a / (norm_p * norm_f + 1e-8), 0.0)
        return jnp.max(a, axis=1, keepdims=True)                     # (B, 1, HW)

    fore_att = att(fg_soft[:, 0, :], bg_feats, params["fore"])
    back_att = att(bg_soft[:, 0, :], fg_feats, params["back"])
    mod = fg_soft - back_att + fore_att
    return (feats_flat * (1.0 + mod)).reshape(b, c, h, w)


# ----------------------------------------------------------------------------
if __name__ == "__main__":
    B, C, H, W, K = 2, 128, 16, 16, 32

    key = jax.random.PRNGKey(0)
    k_feats, k_mask, k_pf, k_pb = jax.random.split(key, 4)

    feats = jax.random.normal(k_feats, (B, C, H, W), jnp.float32)
    mask_logits = jax.random.normal(k_mask, (B, 2, H, W), jnp.float32)
    soft_mask = jax.nn.softmax(mask_logits, axis=1)          # 2-channel (bg, fg) soft mask

    params = dict(fore=init_bgu_params(k_pf, C, K),
                  back=init_bgu_params(k_pb, C, K))

    # Reference first (f32 everywhere), before feats is donated to the kernel.
    ref = _ref_forward(feats, soft_mask, params, K)

    fwd = jax.jit(lambda f, m: lesion_location_mining(f, m, params, K),
                  donate_argnums=(0,))
    out = jax.block_until_ready(fwd(feats, soft_mask))

    assert out.shape == (B, C, H, W)
    assert bool(jnp.all(jnp.isfinite(out)))
    max_diff = float(jnp.max(jnp.abs(out - ref)))
    assert bool(jnp.allclose(out, ref, rtol=2e-2, atol=2e-2)), \
        f"max abs diff {max_diff}"

    print("KERNEL_OK")
</pallas_src>

<mosaic_0001>
module attributes {stable_mosaic.version = 11 : i64} {
  func.func @_llm_fused_kernel(%arg0: i32, %arg1: i32, %arg2: memref<1x128x256xf32, #tpu.memory_space<vmem>>, %arg3: memref<1x2x256xf32, #tpu.memory_space<vmem>>, %arg4: memref<1x32x128xf32, #tpu.memory_space<vmem>>, %arg5: memref<1x32x128xf32, #tpu.memory_space<vmem>>, %arg6: memref<1x128x256xf32, #tpu.memory_space<vmem>>) attributes {dimension_semantics = [#tpu.dimension_semantics<parallel>, #tpu.dimension_semantics<parallel>], iteration_bounds = array<i64: 2, 1>, scalar_prefetch = 0 : i64, scratch_operands = 0 : i64, tpu.core_type = #tpu.core_type<tc>, window_params = [{transform_indices = @transform_0, window_bounds = array<i64: 1, 128, 256>}, {transform_indices = @transform_1, window_bounds = array<i64: 1, 2, 256>}, {transform_indices = @transform_2, window_bounds = array<i64: 1, 32, 128>}, {transform_indices = @transform_3, window_bounds = array<i64: 1, 32, 128>}, {transform_indices = @transform_4, window_bounds = array<i64: 1, 128, 256>}]} {
    %c0 = arith.constant 0 : index
    %c0_0 = arith.constant 0 : index
    %c0_1 = arith.constant 0 : index
    %0 = vector.load %arg2[%c0, %c0_0, %c0_1] : memref<1x128x256xf32, #tpu.memory_space<vmem>>, vector<1x128x256xf32>
    %1 = vector.shape_cast %0 : vector<1x128x256xf32> to vector<128x256xf32>
    %c0_2 = arith.constant 0 : index
    %c0_3 = arith.constant 0 : index
    %c0_4 = arith.constant 0 : index
    %2 = vector.load %arg3[%c0_2, %c0_3, %c0_4] : memref<1x2x256xf32, #tpu.memory_space<vmem>>, vector<1x2x256xf32>
    %3 = vector.shape_cast %2 : vector<1x2x256xf32> to vector<2x256xf32>
    %4 = vector.extract_strided_slice %3 {offsets = [0, 0], sizes = [1, 256], strides = [1, 1]} : vector<2x256xf32> to vector<1x256xf32>
    %5 = vector.extract_strided_slice %3 {offsets = [1, 0], sizes = [1, 256], strides = [1, 1]} : vector<2x256xf32> to vector<1x256xf32>
    %6 = arith.cmpf ogt, %5, %4 : vector<1x256xf32>
    %7 = arith.extui %6 : vector<1x256xi1> to vector<1x256xi32>
    %8 = arith.sitofp %7 : vector<1x256xi32> to vector<1x256xf32>
    %cst = arith.constant 1.000000e+00 : f32
    %9 = vector.broadcast %cst : f32 to vector<1x256xf32>
    %10 = arith.subf %9, %8 : vector<1x256xf32>
    %c0_5 = arith.constant 0 : index
    %c0_6 = arith.constant 0 : index
    %c0_7 = arith.constant 0 : index
    %11 = vector.load %arg4[%c0_5, %c0_6, %c0_7] : memref<1x32x128xf32, #tpu.memory_space<vmem>>, vector<1x32x128xf32>
    %12 = vector.shape_cast %11 : vector<1x32x128xf32> to vector<32x128xf32>
    %13 = vector.broadcast %10 : vector<1x256xf32> to vector<128x256xf32>
    %14 = arith.mulf %1, %13 : vector<128x256xf32>
    %15 = arith.mulf %12, %12 : vector<32x128xf32>
    %cst_8 = arith.constant dense<0.000000e+00> : vector<32xf32>
    %16 = vector.multi_reduction <add>, %15, %cst_8 [1] : vector<32x128xf32> to vector<32xf32>
    %17 = vector.shape_cast %16 : vector<32xf32> to vector<32x1xf32>
    %18 = arith.mulf %14, %14 : vector<128x256xf32>
    %cst_9 = arith.constant dense<0.000000e+00> : vector<256xf32>
    %19 = vector.multi_reduction <add>, %18, %cst_9 [0] : vector<128x256xf32> to vector<256xf32>
    %20 = vector.shape_cast %19 : vector<256xf32> to vector<1x256xf32>
    %21 = math.sqrt %17 : vector<32x1xf32>
    %22 = math.sqrt %20 : vector<1x256xf32>
    %23 = vector.broadcast %21 : vector<32x1xf32> to vector<32x256xf32>
    %24 = vector.broadcast %22 : vector<1x256xf32> to vector<32x256xf32>
    %25 = arith.mulf %23, %24 : vector<32x256xf32>
    %26 = arith.truncf %12 : vector<32x128xf32> to vector<32x128xbf16>
    %27 = arith.truncf %14 : vector<128x256xf32> to vector<128x256xbf16>
    %cst_10 = arith.constant dense<0.000000e+00> : vector<32x256xf32>
    %28 = tpu.matmul %26, %27, %cst_10 {dimension_numbers = #tpu.dot_dimension_numbers<[1], [0], [0], [1], [0, 0, 1, 1], [], []>} : vector<32x128xbf16>, vector<128x256xbf16>, vector<32x256xf32> -> vector<32x256xf32>
    %cst_11 = arith.constant 9.99999993E-9 : f32
    %29 = vector.broadcast %cst_11 : f32 to vector<32x256xf32>
    %30 = arith.addf %25, %29 : vector<32x256xf32>
    %31 = tpu.reciprocal %30 {approx = true} : vector<32x256xf32> -> vector<32x256xf32>
    %32 = arith.mulf %28, %31 : vector<32x256xf32>
    %cst_12 = arith.constant 0.000000e+00 : f32
    %33 = vector.broadcast %cst_12 : f32 to vector<32x256xf32>
    %34 = arith.maximumf %32, %33 : vector<32x256xf32>
    %cst_13 = arith.constant dense<0xFF800000> : vector<256xf32>
    %35 = vector.multi_reduction <maximumf>, %34, %cst_13 [0] : vector<32x256xf32> to vector<256xf32>
    %36 = vector.shape_cast %35 : vector<256xf32> to vector<1x256xf32>
    %c0_14 = arith.constant 0 : index
    %c0_15 = arith.constant 0 : index
    %c0_16 = arith.constant 0 : index
    %37 = vector.load %arg5[%c0_14, %c0_15, %c0_16] : memref<1x32x128xf32, #tpu.memory_space<vmem>>, vector<1x32x128xf32>
    %38 = vector.shape_cast %37 : vector<1x32x128xf32> to vector<32x128xf32>
    %39 = vector.broadcast %8 : vector<1x256xf32> to vector<128x256xf32>
    %40 = arith.mulf %1, %39 : vector<128x256xf32>
    %41 = arith.mulf %38, %38 : vector<32x128xf32>
    %cst_17 = arith.constant dense<0.000000e+00> : vector<32xf32>
    %42 = vector.multi_reduction <add>, %41, %cst_17 [1] : vector<32x128xf32> to vector<32xf32>
    %43 = vector.shape_cast %42 : vector<32xf32> to vector<32x1xf32>
    %44 = arith.mulf %40, %40 : vector<128x256xf32>
    %cst_18 = arith.constant dense<0.000000e+00> : vector<256xf32>
    %45 = vector.multi_reduction <add>, %44, %cst_18 [0] : vector<128x256xf32> to vector<256xf32>
    %46 = vector.shape_cast %45 : vector<256xf32> to vector<1x256xf32>
    %47 = math.sqrt %43 : vector<32x1xf32>
    %48 = math.sqrt %46 : vector<1x256xf32>
    %49 = vector.broadcast %47 : vector<32x1xf32> to vector<32x256xf32>
    %50 = vector.broadcast %48 : vector<1x256xf32> to vector<32x256xf32>
    %51 = arith.mulf %49, %50 : vector<32x256xf32>
    %52 = arith.truncf %38 : vector<32x128xf32> to vector<32x128xbf16>
    %53 = arith.truncf %40 : vector<128x256xf32> to vector<128x256xbf16>
    %cst_19 = arith.constant dense<0.000000e+00> : vector<32x256xf32>
    %54 = tpu.matmul %52, %53, %cst_19 {dimension_numbers = #tpu.dot_dimension_numbers<[1], [0], [0], [1], [0, 0, 1, 1], [], []>} : vector<32x128xbf16>, vector<128x256xbf16>, vector<32x256xf32> -> vector<32x256xf32>
    %cst_20 = arith.constant 9.99999993E-9 : f32
    %55 = vector.broadcast %cst_20 : f32 to vector<32x256xf32>
    %56 = arith.addf %51, %55 : vector<32x256xf32>
    %57 = tpu.reciprocal %56 {approx = true} : vector<32x256xf32> -> vector<32x256xf32>
    %58 = arith.mulf %54, %57 : vector<32x256xf32>
    %cst_21 = arith.constant 0.000000e+00 : f32
    %59 = vector.broadcast %cst_21 : f32 to vector<32x256xf32>
    %60 = arith.maximumf %58, %59 : vector<32x256xf32>
    %cst_22 = arith.constant dense<0xFF800000> : vector<256xf32>
    %61 = vector.multi_reduction <maximumf>, %60, %cst_22 [0] : vector<32x256xf32> to vector<256xf32>
    %62 = vector.shape_cast %61 : vector<256xf32> to vector<1x256xf32>
    %63 = arith.subf %5, %62 : vector<1x256xf32>
    %64 = arith.addf %63, %36 : vector<1x256xf32>
    %cst_23 = arith.constant 1.000000e+00 : f32
    %65 = vector.broadcast %cst_23 : f32 to vector<1x256xf32>
    %66 = arith.addf %65, %64 : vector<1x256xf32>
    %67 = vector.broadcast %66 : vector<1x256xf32> to vector<128x256xf32>
    %68 = arith.mulf %1, %67 : vector<128x256xf32>
    %c0_24 = arith.constant 0 : index
    %c0_25 = arith.constant 0 : index
    %c0_26 = arith.constant 0 : index
    %69 = vector.load %arg6[%c0_24, %c0_25, %c0_26] : memref<1x128x256xf32, #tpu.memory_space<vmem>>, vector<1x128x256xf32>
    %70 = vector.shape_cast %69 : vector<1x128x256xf32> to vector<128x256xf32>
    %71 = vector.shape_cast %68 : vector<128x256xf32> to vector<1x128x256xf32>
    tpu.vector_store %arg6[%c0_24, %c0_25, %c0_26], %71 {strides = array<i32>} : memref<1x128x256xf32, #tpu.memory_space<vmem>>, vector<1x128x256xf32>,
    return
  }
  func.func @transform_0(%arg0: i32, %arg1: i32) -> (i32, i32, i32) {
    %c0_i32 = arith.constant 0 : i32
    %c0_i32_0 = arith.constant 0 : i32
    return %arg0, %c0_i32, %arg1 : i32, i32, i32
  }
  func.func @transform_1(%arg0: i32, %arg1: i32) -> (i32, i32, i32) {
    %c0_i32 = arith.constant 0 : i32
    %c0_i32_0 = arith.constant 0 : i32
    return %arg0, %c0_i32, %arg1 : i32, i32, i32
  }
  func.func @transform_2(%arg0: i32, %arg1: i32) -> (i32, i32, i32) {
    %c0_i32 = arith.constant 0 : i32
    %c0_i32_0 = arith.constant 0 : i32
    %c0_i32_1 = arith.constant 0 : i32
    return %arg0, %c0_i32, %c0_i32_0 : i32, i32, i32
  }
  func.func @transform_3(%arg0: i32, %arg1: i32) -> (i32, i32, i32) {
    %c0_i32 = arith.constant 0 : i32
    %c0_i32_0 = arith.constant 0 : i32
    %c0_i32_1 = arith.constant 0 : i32
    return %arg0, %c0_i32, %c0_i32_0 : i32, i32, i32
  }
  func.func @transform_4(%arg0: i32, %arg1: i32) -> (i32, i32, i32) {
    %c0_i32 = arith.constant 0 : i32
    %c0_i32_0 = arith.constant 0 : i32
    return %arg0, %c0_i32, %arg1 : i32, i32, i32
  }
}

</mosaic_0001>

<bundles_post_ra>
// kernel: _lambda_.1
= control target key start
LH: loop header
LB: loop body
LE: loop exit
PB: predicated region body
PF: predicated region fallthrough
CT: control target
= control target key end

     0   :  { %s1388_s15 = smov 0   ;;  %s1390_s16 = smov 0   ;;  %s1900_s0 = inlined_call_operand.vmem [shape: f32[2,128,256], index: 0, kind: input, shape index: {}, may-alias: {0,4}]   ;;  %s1901_s1 = inlined_call_operand.vmem [shape: f32[2,2,256], index: 1, kind: input, shape index: {}]   ;;  %s1902_s2 = inlined_call_operand.vmem [shape: f32[2,32,128], index: 2, kind: input, shape index: {}]   ;;  %s1903_s3 = inlined_call_operand.vmem [shape: f32[2,32,128], index: 3, kind: input, shape index: {}]   ;;  %s1904_s4 = inlined_call_operand.vmem [shape: f32[2,128,256], index: 4, kind: output, shape index: {}, may-alias: {0,4}]  }
   0x1   :  { %s1392_s17 = smov 0  }
   0x2 LB: > { %s26_s18 = sadd.s32 1, %s1354_s16  ;;  %p1221_p0 = scmp.ge.s32.totalorder %s1358_s17, 1  ;;  %s1358_s17 = sphi %s1392_s17, %s14_s17   ;;  %s1354_s16 = sphi %s1390_s16, %s1906_s16   ;;  %s1350_s15 = sphi %s1388_s15, %s1905_s15  }
   0x3   : > { %p28_p1 = scmp.ge.s32.totalorder %s26_s18, 2  ;;  %p220_p2 = scmp.lt.s32.totalorder %s1358_s17, 3 }
   0x5   : > { %s1908_s18 = smov (%p28_p1, %s26_s18), 0  ;;  %p221_p3 = pnand %p1221_p0, %p220_p2 }
   0x6   : > { %p274_p4 = scmp.lt.s32.totalorder (!%p221_p3), %s1350_s15, 1  ;;  %v359_v0 = vlaneseq (!%p221_p3)  ;;  %v1360_v1 = vmov (!%p221_p3), 0   ;;  %v1361_v7 = vmov (!%p221_p3), 0.0  }
   0x7   : > { %224 = sbr.rel (%p221_p3) target bundleno = 362 (0x16a), region = 36  ;;  %907 = vmatprep.mubr.bf16.mxu1 (!%p221_p3), %v1360_v1  ;;  %595 = vmatprep.mubr.bf16.mxu0 (!%p221_p3), %v1360_v1 }
   0x8   : > { %v1410_v2 = vshrl.u32 (!%p221_p3), %v359_v0, 7 }
   0xa   : > { %v1421_v5 = vsub.s32 (!%p221_p3), 1, %v1410_v2  ;;  %v1424_v6 = vsub.s32 (!%p221_p3), 3, %v1410_v2 }
   0xe   : > { %s1910_s15 = smov (!%p274_p4, %s1350_s15), 1 }
   0xf   : > { %s1236_s19 = sshll.u32 %s1910_s15, 2  ;;  %s1235_s20 = sshll.u32 %s1910_s15, 8 }
  0x10   : > { %s1417_s23 = scalar_lea.vmem %s1901_s1, %s1236_s19  ;;  %s1431_s26 = scalar_lea.vmem %s1900_s0, %s1235_s20 }
  0x11   : > { %v346_v3 = vld [vmem:[%s1417_s23] sm:$0xf]  ;;  %v315_v9 = vld [vmem:[%s1431_s26 + $0x8] sm:$0xff]  ;;  %v317_v13 = vld [vmem:[%s1431_s26 + $0x18] sm:$0xff]  ;;  %s1237_s27 = sshll.u32 %s1910_s15, 5  ;;  %s1793_s10 = scalar_lea.vmem %s1904_s4, %s1235_s20 }
  0x12   : > { %v348_v4 = vrot.slane %v346_v3, 7  ;;  %v314_v14 = vld [vmem:[%s1431_s26] sm:$0xff]  ;;  %v316_v15 = vld [vmem:[%s1431_s26 + $0x10] sm:$0xff]  ;;  %v319_v20 = vld [vmem:[%s1431_s26 + $0x28] sm:$0xff]  ;;  %s1619_s30 = scalar_lea.vmem %s1903_s3, %s1237_s27  ;;  %s1638_s7 = scalar_lea.vmem %s1902_s2, %s1237_s27 }
  0x13   : > { %v321_v21 = vld [vmem:[%s1431_s26 + $0x38] sm:$0xff]  ;;  %v318_v42 = vld [vmem:[%s1431_s26 + $0x20] sm:$0xff]  ;;  %v320_v47 = vld [vmem:[%s1431_s26 + $0x30] sm:$0xff] }
  0x14   : > { %vm350_vm0 = vcmp.gt.f32.partialorder %v346_v3, %v348_v4  ;;  %v323_v0 = vld [vmem:[%s1431_s26 + $0x48] sm:$0xff]  ;;  %v325_v3 = vld [vmem:[%s1431_s26 + $0x58] sm:$0xff] }
  0x15   : > { %v1232_v8 = vsel %vm350_vm0, 1.0, %v1361_v7 }
  0x16   : > { %v678_v10 = vrot.slane %v1232_v8, %v1424_v6  ;;  %v674_v11 = vrot.slane %v1232_v8, %v1421_v5  ;;  %v353_v12 = vsub.f32 1.0, %v1232_v8 }
  0x18   : > { %v1440_v16 = vrot.slane %v678_v10, %v1421_v5  ;;  %v1443_v17 = vrot.slane %v674_v11, %v1421_v5  ;;  %v366_v18 = vrot.slane %v353_v12, %v1424_v6  ;;  %v362_v19 = vrot.slane %v353_v12, %v1421_v5  ;;  %v322_v10 = vld [vmem:[%s1431_s26 + $0x40] sm:$0xff]  ;;  %v324_v11 = vld [vmem:[%s1431_s26 + $0x50] sm:$0xff] }
  0x1a   : > { %v690_v22 = vmul.f32 %v1440_v16, %v315_v9  ;;  %v692_v23 = vmul.f32 %v1440_v16, %v317_v13  ;;  %v689_v24 = vmul.f32 %v1443_v17, %v314_v14  ;;  %v691_v25 = vmul.f32 %v1443_v17, %v316_v15 }
  0x1b   : > { %v1454_v26 = vrot.slane %v366_v18, %v1421_v5  ;;  %v1457_v27 = vrot.slane %v362_v19, %v1421_v5  ;;  %v694_v28 = vmul.f32 %v1440_v16, %v319_v20  ;;  %v696_v29 = vmul.f32 %v1440_v16, %v321_v21 }
  0x1c   : > { %v734_v30 = vmul.f32 %v690_v22, %v690_v22  ;;  %v736_v31 = vmul.f32 %v692_v23, %v692_v23  ;;  %v860_v32 = vpack.c.bf16 %v692_v23, %v690_v22  ;;  %v733_v33 = vmul.f32 %v689_v24, %v689_v24 }
  0x1d   : > { %v735_v34 = vmul.f32 %v691_v25, %v691_v25  ;;  %v859_v35 = vpack.c.bf16 %v691_v25, %v689_v24  ;;  %v378_v36 = vmul.f32 %v1454_v26, %v315_v9  ;;  %v380_v37 = vmul.f32 %v1454_v26, %v317_v13 }
  0x1e   : > { %v786_v38 = vadd.f32 %v736_v31, %v734_v30  ;;  %875 = vmatprep.subr.bf16.mxu1 %v860_v32  ;;  %v377_v39 = vmul.f32 %v1457_v27, %v314_v14  ;;  %v379_v40 = vmul.f32 %v1457_v27, %v316_v15  ;;  %v738_v41 = vmul.f32 %v694_v28, %v694_v28  ;;  %v1482_v32 = vld [vmem:[%s1431_s26 + $0x68] sm:$0xff] }
  0x1f   : > { %v765_v43 = vadd.f32 %v735_v34, %v733_v33  ;;  %876 = vmatpush1.bf16.msra.mxu1 %v859_v35  ;;  %v422_v44 = vmul.f32 %v378_v36, %v378_v36  ;;  %v424_v45 = vmul.f32 %v380_v37, %v380_v37  ;;  %v548_v46 = vpack.c.bf16 %v380_v37, %v378_v36  ;;  %v1485_v33 = vld [vmem:[%s1431_s26 + $0x78] sm:$0xff] }
  0x20   : > { %v421_v48 = vmul.f32 %v377_v39, %v377_v39  ;;  %v423_v49 = vmul.f32 %v379_v40, %v379_v40  ;;  %v547_v50 = vpack.c.bf16 %v379_v40, %v377_v39  ;;  %v740_v51 = vmul.f32 %v696_v29, %v696_v29 }
  0x21   : > { %v474_v52 = vadd.f32 %v424_v45, %v422_v44  ;;  %563 = vmatprep.subr.bf16.mxu0 %v548_v46  ;;  %v787_v53 = vadd.f32 %v786_v38, %v738_v41  ;;  %v862_v54 = vpack.c.bf16 %v696_v29, %v694_v28  ;;  %v693_v55 = vmul.f32 %v1443_v17, %v318_v42 }
  0x22   : > { %v453_v56 = vadd.f32 %v423_v49, %v421_v48  ;;  %564 = vmatpush1.bf16.msra.mxu0 %v547_v50  ;;  %v695_v57 = vmul.f32 %v1443_v17, %v320_v47  ;;  %v382_v58 = vmul.f32 %v1454_v26, %v319_v20  ;;  %v384_v59 = vmul.f32 %v1454_v26, %v321_v21  ;;  %v1496_v50 = vld [vmem:[%s1431_s26 + $0x60] sm:$0xff] }
  0x23   : > { %v788_v60 = vadd.f32 %v787_v53, %v740_v51  ;;  %877 = vmatprep.subr.bf16.mxu1 %v862_v54  ;;  %v737_v61 = vmul.f32 %v693_v55, %v693_v55  ;;  %v381_v62 = vmul.f32 %v1457_v27, %v318_v42  ;;  %v383_v63 = vmul.f32 %v1457_v27, %v320_v47  ;;  %v1499_v51 = vld [vmem:[%s1431_s26 + $0x70] sm:$0xff] }
  0x24   : > { %v739_v4 = vmul.f32 %v695_v57, %v695_v57  ;;  %v861_v7 = vpack.c.bf16 %v695_v57, %v693_v55  ;;  %v426_v8 = vmul.f32 %v382_v58, %v382_v58  ;;  %v428_v9 = vmul.f32 %v384_v59, %v384_v59 }
  0x25   : > { %v766_v12 = vadd.f32 %v765_v43, %v737_v61  ;;  %v550_v13 = vpack.c.bf16 %v384_v59, %v382_v58  ;;  %v425_v14 = vmul.f32 %v381_v62, %v381_v62  ;;  %v427_v15 = vmul.f32 %v383_v63, %v383_v63 }
  0x26   : > { %878 = vmatpush1.bf16.msra.mxu1 %v861_v7  ;;  %v475_v18 = vadd.f32 %v474_v52, %v426_v8  ;;  %v549_v19 = vpack.c.bf16 %v383_v63, %v381_v62  ;;  %v698_v20 = vmul.f32 %v1440_v16, %v323_v0  ;;  %v700_v21 = vmul.f32 %v1440_v16, %v325_v3  ;;  %v1512_v8 = vld [vmem:[%s1431_s26 + $0x88] sm:$0xff] }
  0x27   : > { %v767_v22 = vadd.f32 %v766_v12, %v739_v4  ;;  %565 = vmatprep.subr.bf16.mxu0 %v550_v13  ;;  %v454_v23 = vadd.f32 %v453_v56, %v425_v14  ;;  %v697_v24 = vmul.f32 %v1443_v17, %v322_v10  ;;  %v699_v25 = vmul.f32 %v1443_v17, %v324_v11  ;;  %v1515_v13 = vld [vmem:[%s1431_s26 + $0x98] sm:$0xff]  ;;  %v1518_v14 = vld [vmem:[%s1431_s26 + $0x80] sm:$0xff] }
  0x28   : > { %v476_v28 = vadd.f32 %v475_v18, %v428_v9  ;;  %566 = vmatpush1.bf16.msra.mxu0 %v549_v19  ;;  %v742_v29 = vmul.f32 %v698_v20, %v698_v20  ;;  %v744_v30 = vmul.f32 %v700_v21, %v700_v21  ;;  %v864_v31 = vpack.c.bf16 %v700_v21, %v698_v20 }
  0x29   : > { %v455_v34 = vadd.f32 %v454_v23, %v427_v15  ;;  %v741_v35 = vmul.f32 %v697_v24, %v697_v24  ;;  %v743_v36 = vmul.f32 %v699_v25, %v699_v25  ;;  %v863_v37 = vpack.c.bf16 %v699_v25, %v697_v24  ;;  %v1521_v15 = vld [vmem:[%s1431_s26 + $0x90] sm:$0xff] }
  0x2a   : > { %v789_v38 = vadd.f32 %v788_v60, %v742_v29  ;;  %879 = vmatprep.subr.bf16.mxu1 %v864_v31  ;;  %v386_v39 = vmul.f32 %v1454_v26, %v323_v0  ;;  %v388_v40 = vmul.f32 %v1454_v26, %v325_v3  ;;  %v385_v41 = vmul.f32 %v1457_v27, %v322_v10 }
  0x2b   : > { %v768_v42 = vadd.f32 %v767_v22, %v741_v35  ;;  %880 = vmatpush1.bf16.msra.mxu1 %v863_v37  ;;  %v387_v43 = vmul.f32 %v1457_v27, %v324_v11  ;;  %v702_v44 = vmul.f32 %v1440_v16, %v1482_v32  ;;  %v704_v45 = vmul.f32 %v1440_v16, %v1485_v33 }
  0x2c   : > { %v790_v46 = vadd.f32 %v789_v38, %v744_v30  ;;  %v430_v47 = vmul.f32 %v386_v39, %v386_v39  ;;  %v432_v48 = vmul.f32 %v388_v40, %v388_v40  ;;  %v552_v49 = vpack.c.bf16 %v388_v40, %v386_v39 }
  0x2d   : > { %v769_v52 = vadd.f32 %v768_v42, %v743_v36  ;;  %v429_v53 = vmul.f32 %v385_v41, %v385_v41  ;;  %v431_v54 = vmul.f32 %v387_v43, %v387_v43  ;;  %v551_v55 = vpack.c.bf16 %v387_v43, %v385_v41  ;;  %v1534_v42 = vld [vmem:[%s1431_s26 + $0xa8] sm:$0xff]  ;;  %v1537_v43 = vld [vmem:[%s1431_s26 + $0xb8] sm:$0xff] }
  0x2e   : > { %v477_v56 = vadd.f32 %v476_v28, %v430_v47  ;;  %567 = vmatprep.subr.bf16.mxu0 %v552_v49  ;;  %v746_v57 = vmul.f32 %v702_v44, %v702_v44  ;;  %v748_v58 = vmul.f32 %v704_v45, %v704_v45  ;;  %v866_v59 = vpack.c.bf16 %v704_v45, %v702_v44 }
  0x2f   : > { %v456_v60 = vadd.f32 %v455_v34, %v429_v53  ;;  %568 = vmatpush1.bf16.msra.mxu0 %v551_v55  ;;  %v701_v61 = vmul.f32 %v1443_v17, %v1496_v50  ;;  %v703_v62 = vmul.f32 %v1443_v17, %v1499_v51  ;;  %v390_v63 = vmul.f32 %v1454_v26, %v1482_v32 }
  0x30   : > { %v478_v0 = vadd.f32 %v477_v56, %v432_v48  ;;  %v791_v3 = vadd.f32 %v790_v46, %v746_v57  ;;  %881 = vmatprep.subr.bf16.mxu1 %v866_v59  ;;  %v392_v4 = vmul.f32 %v1454_v26, %v1485_v33  ;;  %v389_v7 = vmul.f32 %v1457_v27, %v1496_v50 }
  0x31   : > { %v457_v9 = vadd.f32 %v456_v60, %v431_v54  ;;  %v745_v10 = vmul.f32 %v701_v61, %v701_v61  ;;  %v747_v11 = vmul.f32 %v703_v62, %v703_v62  ;;  %v865_v12 = vpack.c.bf16 %v703_v62, %v701_v61  ;;  %v1552_v62 = vld [vmem:[%s1431_s26 + $0xa0] sm:$0xff] }
  0x32   : > { %v792_v18 = vadd.f32 %v791_v3, %v748_v58  ;;  %v434_v19 = vmul.f32 %v390_v63, %v390_v63  ;;  %v436_v20 = vmul.f32 %v392_v4, %v392_v4  ;;  %v554_v21 = vpack.c.bf16 %v392_v4, %v390_v63  ;;  %v1555_v63 = vld [vmem:[%s1431_s26 + $0xb0] sm:$0xff] }
  0x33   : > { %v770_v22 = vadd.f32 %v769_v52, %v745_v10  ;;  %882 = vmatpush1.bf16.msra.mxu1 %v865_v12  ;;  %v391_v23 = vmul.f32 %v1457_v27, %v1499_v51  ;;  %v433_v24 = vmul.f32 %v389_v7, %v389_v7  ;;  %v706_v25 = vmul.f32 %v1440_v16, %v1512_v8 }
  0x34   : > { %v479_v28 = vadd.f32 %v478_v0, %v434_v19  ;;  %569 = vmatprep.subr.bf16.mxu0 %v554_v21  ;;  %v708_v29 = vmul.f32 %v1440_v16, %v1515_v13  ;;  %v705_v30 = vmul.f32 %v1443_v17, %v1518_v14  ;;  %v707_v31 = vmul.f32 %v1443_v17, %v1521_v15 }
  0x35   : > { %v771_v34 = vadd.f32 %v770_v22, %v747_v11  ;;  %v435_v35 = vmul.f32 %v391_v23, %v391_v23  ;;  %v458_v36 = vadd.f32 %v457_v9, %v433_v24  ;;  %v553_v37 = vpack.c.bf16 %v391_v23, %v389_v7 }
  0x36   : > { %v480_v38 = vadd.f32 %v479_v28, %v436_v20  ;;  %v750_v39 = vmul.f32 %v706_v25, %v706_v25  ;;  %v752_v40 = vmul.f32 %v708_v29, %v708_v29  ;;  %v868_v41 = vpack.c.bf16 %v708_v29, %v706_v25  ;;  %v1568_v28 = vld [vmem:[%s1431_s26 + $0xc8] sm:$0xff] }
  0x37   : > { %v459_v44 = vadd.f32 %v458_v36, %v435_v35  ;;  %570 = vmatpush1.bf16.msra.mxu0 %v553_v37  ;;  %v749_v45 = vmul.f32 %v705_v30, %v705_v30  ;;  %v751_v46 = vmul.f32 %v707_v31, %v707_v31  ;;  %v867_v47 = vpack.c.bf16 %v707_v31, %v705_v30  ;;  %v1571_v35 = vld [vmem:[%s1431_s26 + $0xd8] sm:$0xff]  ;;  %v1574_v36 = vld [vmem:[%s1431_s26 + $0xc0] sm:$0xff]  ;;  %v1577_v37 = vld [vmem:[%s1431_s26 + $0xd0] sm:$0xff] }
  0x38   : > { %v793_v48 = vadd.f32 %v792_v18, %v750_v39  ;;  %883 = vmatprep.subr.bf16.mxu1 %v868_v41  ;;  %v394_v49 = vmul.f32 %v1454_v26, %v1512_v8  ;;  %v396_v52 = vmul.f32 %v1454_v26, %v1515_v13  ;;  %v393_v53 = vmul.f32 %v1457_v27, %v1518_v14 }
  0x39   : > { %v772_v54 = vadd.f32 %v771_v34, %v749_v45  ;;  %884 = vmatpush1.bf16.msra.mxu1 %v867_v47  ;;  %v395_v55 = vmul.f32 %v1457_v27, %v1521_v15  ;;  %v710_v56 = vmul.f32 %v1440_v16, %v1534_v42  ;;  %v712_v57 = vmul.f32 %v1440_v16, %v1537_v43 }
  0x3a   : > { %v794_v58 = vadd.f32 %v793_v48, %v752_v40  ;;  %v438_v59 = vmul.f32 %v394_v49, %v394_v49  ;;  %v440_v60 = vmul.f32 %v396_v52, %v396_v52  ;;  %v556_v61 = vpack.c.bf16 %v396_v52, %v394_v49 }
  0x3b   : > { %v773_v0 = vadd.f32 %v772_v54, %v751_v46  ;;  %v437_v3 = vmul.f32 %v393_v53, %v393_v53  ;;  %v439_v4 = vmul.f32 %v395_v55, %v395_v55  ;;  %v555_v7 = vpack.c.bf16 %v395_v55, %v393_v53 }
  0x3c   : > { %v481_v9 = vadd.f32 %v480_v38, %v438_v59  ;;  %571 = vmatprep.subr.bf16.mxu0 %v556_v61  ;;  %v754_v10 = vmul.f32 %v710_v56, %v710_v56  ;;  %v756_v11 = vmul.f32 %v712_v57, %v712_v57  ;;  %v870_v12 = vpack.c.bf16 %v712_v57, %v710_v56 }
  0x3d   : > { %v460_v18 = vadd.f32 %v459_v44, %v437_v3  ;;  %572 = vmatpush1.bf16.msra.mxu0 %v555_v7  ;;  %v709_v19 = vmul.f32 %v1443_v17, %v1552_v62  ;;  %v711_v20 = vmul.f32 %v1443_v17, %v1555_v63  ;;  %v398_v21 = vmul.f32 %v1454_v26, %v1534_v42  ;;  %v1593_v3 = vld [vmem:[%s1431_s26 + $0xf8] sm:$0xff] }
  0x3e   : > { %v482_v22 = vadd.f32 %v481_v9, %v440_v60  ;;  %v795_v23 = vadd.f32 %v794_v58, %v754_v10  ;;  %885 = vmatprep.subr.bf16.mxu1 %v870_v12  ;;  %v400_v24 = vmul.f32 %v1454_v26, %v1537_v43  ;;  %v397_v25 = vmul.f32 %v1457_v27, %v1552_v62 }
  0x3f   : > { %v461_v29 = vadd.f32 %v460_v18, %v439_v4  ;;  %v753_v30 = vmul.f32 %v709_v19, %v709_v19  ;;  %v755_v31 = vmul.f32 %v711_v20, %v711_v20  ;;  %v869_v34 = vpack.c.bf16 %v711_v20, %v709_v19 }
  0x40   : > { %v796_v38 = vadd.f32 %v795_v23, %v756_v11  ;;  %v442_v39 = vmul.f32 %v398_v21, %v398_v21  ;;  %v444_v40 = vmul.f32 %v400_v24, %v400_v24  ;;  %v558_v41 = vpack.c.bf16 %v400_v24, %v398_v21 }
  0x41   : > { %v774_v44 = vadd.f32 %v773_v0, %v753_v30  ;;  %886 = vmatpush1.bf16.msra.mxu1 %v869_v34  ;;  %v399_v45 = vmul.f32 %v1457_v27, %v1555_v63  ;;  %v441_v46 = vmul.f32 %v397_v25, %v397_v25  ;;  %v714_v47 = vmul.f32 %v1440_v16, %v1568_v28  ;;  %v1590_v0 = vld [vmem:[%s1431_s26 + $0xe8] sm:$0xff]  ;;  %v1612_v34 = vld [vmem:[%s1431_s26 + $0xf0] sm:$0xff] }
  0x42   : > { %v483_v48 = vadd.f32 %v482_v22, %v442_v39  ;;  %573 = vmatprep.subr.bf16.mxu0 %v558_v41  ;;  %v716_v49 = vmul.f32 %v1440_v16, %v1571_v35  ;;  %v713_v52 = vmul.f32 %v1443_v17, %v1574_v36  ;;  %v715_v53 = vmul.f32 %v1443_v17, %v1577_v37 }
  0x43   : > { %v775_v54 = vadd.f32 %v774_v44, %v755_v31  ;;  %v443_v55 = vmul.f32 %v399_v45, %v399_v45  ;;  %v462_v56 = vadd.f32 %v461_v29, %v441_v46  ;;  %v557_v57 = vpack.c.bf16 %v399_v45, %v397_v25  ;;  %v1609_v31 = vld [vmem:[%s1431_s26 + $0xe0] sm:$0xff] }
  0x44   : > { %v484_v58 = vadd.f32 %v483_v48, %v444_v40  ;;  %v758_v59 = vmul.f32 %v714_v47, %v714_v47  ;;  %v760_v60 = vmul.f32 %v716_v49, %v716_v49  ;;  %v872_v61 = vpack.c.bf16 %v716_v49, %v714_v47 }
  0x45   : > { %v463_v4 = vadd.f32 %v462_v56, %v443_v55  ;;  %574 = vmatpush1.bf16.msra.mxu0 %v557_v57  ;;  %v757_v7 = vmul.f32 %v713_v52, %v713_v52  ;;  %v759_v9 = vmul.f32 %v715_v53, %v715_v53  ;;  %v871_v10 = vpack.c.bf16 %v715_v53, %v713_v52  ;;  %v666_v57 = vld [vmem:[%s1619_s30] sm:$0xff] }
  0x46   : > { %v797_v11 = vadd.f32 %v796_v38, %v758_v59  ;;  %887 = vmatprep.subr.bf16.mxu1 %v872_v61  ;;  %v402_v12 = vmul.f32 %v1454_v26, %v1568_v28  ;;  %v404_v18 = vmul.f32 %v1454_v26, %v1571_v35  ;;  %v401_v19 = vmul.f32 %v1457_v27, %v1574_v36 }
  0x47   : > { %v776_v20 = vadd.f32 %v775_v54, %v757_v7  ;;  %888 = vmatpush1.bf16.msra.mxu1 %v871_v10  ;;  %v403_v21 = vmul.f32 %v1457_v27, %v1577_v37  ;;  %v718_v22 = vmul.f32 %v1440_v16, %v1590_v0  ;;  %v720_v23 = vmul.f32 %v1440_v16, %v1593_v3 }
  0x48   : > { %v798_v24 = vadd.f32 %v797_v11, %v760_v60  ;;  %v446_v25 = vmul.f32 %v402_v12, %v402_v12  ;;  %v448_v29 = vmul.f32 %v404_v18, %v404_v18  ;;  %v560_v30 = vpack.c.bf16 %v404_v18, %v402_v12 }
  0x49   : > { %v777_v38 = vadd.f32 %v776_v20, %v759_v9  ;;  %v445_v39 = vmul.f32 %v401_v19, %v401_v19  ;;  %v447_v40 = vmul.f32 %v403_v21, %v403_v21  ;;  %v559_v41 = vpack.c.bf16 %v403_v21, %v401_v19  ;;  %v354_v19 = vld [vmem:[%s1638_s7] sm:$0xff]  ;;  %v355_v20 = vld [vmem:[%s1638_s7 + $0x8] sm:$0xff] }
  0x4a   : > { %v485_v16 = vadd.f32 %v484_v58, %v446_v25  ;;  %575 = vmatprep.subr.bf16.mxu0 %v560_v30  ;;  %v762_v44 = vmul.f32 %v718_v22, %v718_v22  ;;  %v764_v45 = vmul.f32 %v720_v23, %v720_v23  ;;  %v874_v46 = vpack.c.bf16 %v720_v23, %v718_v22  ;;  %v667_v58 = vld [vmem:[%s1619_s30 + $0x8] sm:$0xff] }
  0x4b   : > { %v464_v47 = vadd.f32 %v463_v4, %v445_v39  ;;  %576 = vmatpush1.bf16.msra.mxu0 %v559_v41  ;;  %v717_v48 = vmul.f32 %v1443_v17, %v1609_v31  ;;  %v719_v49 = vmul.f32 %v1443_v17, %v1612_v34  ;;  %v406_v52 = vmul.f32 %v1454_v26, %v1590_v0 }
  0x4c   : > { %v486_v53 = vadd.f32 %v485_v16, %v448_v29  ;;  %v799_v54 = vadd.f32 %v798_v24, %v762_v44  ;;  %889 = vmatprep.subr.bf16.mxu1 %v874_v46  ;;  %v408_v55 = vmul.f32 %v1454_v26, %v1593_v3  ;;  %v405_v56 = vmul.f32 %v1457_v27, %v1609_v31  ;;  %v668_v29 = vld [vmem:[%s1619_s30 + $0x10] sm:$0xff] }
  0x4d   : > { %v465_v17 = vadd.f32 %v464_v47, %v447_v40  ;;  %v761_v59 = vmul.f32 %v717_v48, %v717_v48  ;;  %v763_v60 = vmul.f32 %v719_v49, %v719_v49  ;;  %v873_v61 = vpack.c.bf16 %v719_v49, %v717_v48  ;;  %v356_v46 = vld [vmem:[%s1638_s7 + $0x10] sm:$0xff]  ;;  %v357_v47 = vld [vmem:[%s1638_s7 + $0x18] sm:$0xff] }
  0x4e   : > { %v800_v4 = vadd.f32 %v799_v54, %v764_v45  ;;  %v450_v7 = vmul.f32 %v406_v52, %v406_v52  ;;  %v452_v26 = vmul.f32 %v408_v55, %v408_v55  ;;  %v562_v9 = vpack.c.bf16 %v408_v55, %v406_v52 }
  0x4f   : > { %v778_v10 = vadd.f32 %v777_v38, %v761_v59  ;;  %890 = vmatpush1.bf16.msra.mxu1 %v873_v61  ;;  %v407_v11 = vmul.f32 %v1457_v27, %v1612_v34  ;;  %v449_v12 = vmul.f32 %v405_v56, %v405_v56  ;;  %v857_v18 = vpack.c.bf16 %v667_v58, %v666_v57  ;;  %v669_v27 = vld [vmem:[%s1619_s30 + $0x18] sm:$0xff] }
  0x50   : > { %v487_v21 = vadd.f32 %v486_v53, %v450_v7  ;;  %577 = vmatprep.subr.bf16.mxu0 %v562_v9  ;;  %v545_v38 = vpack.c.bf16 %v355_v20, %v354_v19  ;;  %v723_v39 = vmul.f32 %v668_v29, %v668_v29  ;;  %v721_v41 = vmul.f32 %v666_v57, %v666_v57 }
  0x51   : > { %v779_v22 = vadd.f32 %v778_v10, %v763_v60  ;;  %v451_v23 = vmul.f32 %v407_v11, %v407_v11  ;;  %v466_v24 = vadd.f32 %v465_v17, %v449_v12  ;;  %v561_v25 = vpack.c.bf16 %v407_v11, %v405_v56 }
  0x52   : > { %v488_v30 = vadd.f32 %v487_v21, %v452_v26  ;;  %908 = vmatmul.mubr.bf16.vlgmr.msra.gmra.mrb[0].mxu1 %v857_v18  ;;  %729 = vadd.xlane.f32.xlu1 %v723_v39  ;;  %v724_v16 = vmul.f32 %v669_v27, %v669_v27  ;;  %v722_v44 = vmul.f32 %v667_v58, %v667_v58  ;;  %v801_v58 = vrot.slane %v800_v4, 4 }
  0x53   : > { %v467_v40 = vadd.f32 %v466_v24, %v451_v23  ;;  %578 = vmatpush1.bf16.msra.mxu0 %v561_v25  ;;  %917 = vmatprep.mubr.bf16.mxu1 %v1360_v1  ;;  %v858_v45 = vpack.c.bf16 %v669_v27, %v668_v29  ;;  %v410_v48 = vmul.f32 %v355_v20, %v355_v20  ;;  %v780_v55 = vrot.slane %v779_v22, 4 }
  0x54   : > { %725 = vadd.xlane.f32.xlu0 %v721_v41  ;;  %v409_v49 = vmul.f32 %v354_v19, %v354_v19  ;;  %v546_v52 = vpack.c.bf16 %v357_v47, %v356_v46  ;;  %v412_v53 = vmul.f32 %v357_v47, %v357_v47  ;;  %v411_v54 = vmul.f32 %v356_v46, %v356_v46 }
  0x55   : > { %v468_v56 = vrot.slane %v467_v40, 4  ;;  %v489_v57 = vrot.slane %v488_v30, 4  ;;  %v802_v60 = vadd.f32 %v801_v58, %v800_v4 }
  0x56   : > { %596 = vmatmul.mubr.bf16.vlgmr.msra.gmra.mrb[0].mxu0 %v545_v38  ;;  %731 = vadd.xlane.f32.xlu1 %v724_v16 }
  0x57   : > { %605 = vmatprep.mubr.bf16.mxu0 %v1360_v1  ;;  %v781_v1 = vadd.f32 %v780_v55, %v779_v22  ;;  %v469_v17 = vadd.f32 %v468_v56, %v467_v40  ;;  %v490_v59 = vadd.f32 %v489_v57, %v488_v30  ;;  %v803_v9 = vrot.slane %v802_v60, 2 }
  0x58   : > { %727 = vadd.xlane.f32.xlu0 %v722_v44 }
  0x59   : > { %v782_v61 = vrot.slane %v781_v1, 2  ;;  %v470_v7 = vrot.slane %v469_v17, 2  ;;  %v491_v26 = vrot.slane %v490_v59, 2  ;;  %v804_v18 = vadd.f32 %v803_v9, %v802_v60 }
  0x5a   : > { %918 = vmatmul.mubr.bf16.gmra.mrb[4].mxu1 %v858_v45  ;;  %415 = vadd.xlane.f32.xlu1 %v410_v48 }
  0x5b   : > { %v783_v10 = vadd.f32 %v782_v61, %v781_v1  ;;  %v471_v11 = vadd.f32 %v470_v7, %v469_v17  ;;  %v492_v12 = vadd.f32 %v491_v26, %v490_v59  ;;  %v805_v24 = vrot.slane %v804_v18, 1 }
  0x5c   : > { %413 = vadd.xlane.f32.xlu0 %v409_v49 }
  0x5d   : > { %v784_v19 = vrot.slane %v783_v10, 1  ;;  %v472_v20 = vrot.slane %v471_v11, 1  ;;  %v493_v23 = vrot.slane %v492_v12, 1  ;;  %v1658_v30 = vadd.f32 %v805_v24, %v804_v18 }
  0x5e   : > { %606 = vmatmul.mubr.bf16.gmra.mrb[4].mxu0 %v546_v52  ;;  %419 = vadd.xlane.f32.xlu1 %v412_v53 }
  0x5f   : > { %v785_v22 = vadd.f32 %v784_v19, %v783_v10  ;;  %v1654_v29 = vadd.f32 %v472_v20, %v471_v11  ;;  %v1656_v4 = vadd.f32 %v493_v23, %v492_v12  ;;  %vm844_vm6 = vcmp.eq.f32.partialorder %v1658_v30, inf }
  0x60   : > { %417 = vadd.xlane.f32.xlu0 %v411_v54  ;;  %v847_v26 = vand.u32 2147483648, %v1658_v30  ;;  %vm846_vm10 = vcmp.eq.f32.partialorder %v1658_v30, 0.0 }
  0x61   : > { %1267 = vrsqrt.f32 %v785_v22  ;;  %vm525_vm1 = vcmp.eq.f32.partialorder %v1654_v29, inf  ;;  %vm527_vm2 = vcmp.eq.f32.partialorder %v1654_v29, 0.0  ;;  %v528_v53 = vand.u32 2147483648, %v1654_v29 }
  0x62   : > { %1269 = vrsqrt.f32 %v1654_v29  ;;  %vm837_vm3 = vcmp.eq.f32.partialorder %v785_v22, inf  ;;  %vm532_vm4 = vcmp.eq.f32.partialorder %v1656_v4, inf  ;;  %vm534_vm5 = vcmp.eq.f32.partialorder %v1656_v4, 0.0 }
  0x63   : > { %1271 = vrsqrt.f32 %v1656_v4  ;;  %v535_v58 = vand.u32 2147483648, %v1656_v4  ;;  %v840_v1 = vand.u32 2147483648, %v785_v22  ;;  %vm839_vm8 = vcmp.eq.f32.partialorder %v785_v22, 0.0 }
  0x64   : > { %1273 = vrsqrt.f32 %v1658_v30 }
  0x6b   : > { %v1268_v41 = vpop.eup %1267 }
  0x6c   : > { %v1270_v16 = vpop.eup %1269  ;;  %v836_v48 = vmul.f32 %v1268_v41, %v785_v22 }
  0x6d   : > { %v1272_v44 = vpop.eup %1271  ;;  %v524_v52 = vmul.f32 %v1270_v16, %v1654_v29 }
  0x6e   : > { %v1274_v45 = vpop.eup %1273  ;;  %v531_v54 = vmul.f32 %v1272_v44, %v1656_v4  ;;  %v838_v59 = vsel %vm837_vm3, %v785_v22, %v836_v48 }
  0x6f   : > { %v843_v56 = vmul.f32 %v1274_v45, %v1658_v30  ;;  %v526_v61 = vsel %vm525_vm1, %v1654_v29, %v524_v52  ;;  %v1708_v19 = vsel %vm839_vm8, %v840_v1, %v838_v59 }
  0x70   : > { %v533_v7 = vsel %vm532_vm4, %v1656_v4, %v531_v54  ;;  %v1714_v24 = vsel %vm527_vm2, %v528_v53, %v526_v61 }
  0x71   : > { %v845_v11 = vsel %vm844_vm6, %v1658_v30, %v843_v56  ;;  %v1718_v22 = vsel %vm534_vm5, %v535_v58, %v533_v7 }
  0x72   : > { %v848_v16 = vsel %vm846_vm10, %v847_v26, %v845_v11 }
  0xdf   : > { %v1652_v25 = vpop.xlane.xlu1 %729 }
  0xe0   : > { %vm823_vm14 = vcmp.eq.f32.partialorder %v1652_v25, inf  ;;  %vm825_vm0 = vcmp.eq.f32.partialorder %v1652_v25, 0.0  ;;  %v826_v52 = vand.u32 2147483648, %v1652_v25 }
  0xe1   : > { %v1650_v21 = vpop.xlane.xlu0 %725 }
  0xe2   : > { %1275 = vrsqrt.f32 %v1650_v21  ;;  %vm809_vm7 = vcmp.eq.f32.partialorder %v1650_v21, inf  ;;  %v812_v10 = vand.u32 2147483648, %v1650_v21  ;;  %vm811_vm11 = vcmp.eq.f32.partialorder %v1650_v21, 0.0 }
  0xe3   : > { %v1662_v39 = vpop.xlane.xlu1 %731 }
  0xe4   : > { %vm830_vm2 = vcmp.eq.f32.partialorder %v1662_v39, inf  ;;  %vm832_vm4 = vcmp.eq.f32.partialorder %v1662_v39, 0.0 }
  0xe5   : > { %v1660_v38 = vpop.xlane.xlu0 %727 }
  0xe6   : > { %1277 = vrsqrt.f32 %v1660_v38  ;;  %vm816_vm9 = vcmp.eq.f32.partialorder %v1660_v38, inf  ;;  %v819_v23 = vand.u32 2147483648, %v1660_v38  ;;  %vm818_vm13 = vcmp.eq.f32.partialorder %v1660_v38, 0.0 }
  0xe7   : > { %v1671_v27 = vpop.xlane.xlu1 %415 }
  0xe8   : > { %vm504_vm15 = vcmp.eq.f32.partialorder %v1671_v27, inf  ;;  %v507_v53 = vand.u32 2147483648, %v1671_v27  ;;  %vm506_vm3 = vcmp.eq.f32.partialorder %v1671_v27, 0.0 }
  0xe9   : > { %v1668_v40 = vpop.xlane.xlu0 %413 }
  0xea   : > { %1279 = vrsqrt.f32 %v1668_v40  ;;  %vm497_vm12 = vcmp.eq.f32.partialorder %v1668_v40, inf  ;;  %v500_v29 = vand.u32 2147483648, %v1668_v40  ;;  %vm499_vm1 = vcmp.eq.f32.partialorder %v1668_v40, 0.0 }
  0xeb   : > { %1281 = vrsqrt.f32 %v1671_v27  ;;  %v1681_v49 = vpop.xlane.xlu1 %419 }
  0xec   : > { %1283 = vrsqrt.f32 %v1652_v25  ;;  %v1276_v47 = vpop.eup %1275  ;;  %vm518_vm5 = vcmp.eq.f32.partialorder %v1681_v49, inf  ;;  %vm520_vm6 = vcmp.eq.f32.partialorder %v1681_v49, 0.0 }
  0xed   : > { %v1676_v46 = vpop.xlane.xlu0 %417  ;;  %1285 = vrsqrt.f32 %v1662_v39  ;;  %v808_v57 = vmul.f32 %v1276_v47, %v1650_v21 }
  0xee   : > { %1287 = vrsqrt.f32 %v1676_v46  ;;  %vm513_vm8 = vcmp.eq.f32.partialorder %v1676_v46, 0.0 }
  0xef   : > { %1289 = vrsqrt.f32 %v1681_v49  ;;  %v810_v12 = vsel %vm809_vm7, %v1650_v21, %v808_v57  ;;  %vm511_vm7 = vcmp.eq.f32.partialorder %v1676_v46, inf }
  0xf0   : > { %v1278_v55 = vpop.eup %1277  ;;  %v813_v45 = vsel %vm811_vm11, %v812_v10, %v810_v12  ;;  %v514_v10 = vand.u32 2147483648, %v1676_v46 }
  0xf1   : > { %v815_v60 = vmul.f32 %v1278_v55, %v1660_v38  ;;  %v849_v56 = vmul.f32 %v1708_v19, %v813_v45  ;;  %v850_v58 = vmul.f32 %v848_v16, %v813_v45 }
  0xf3   : > { %v817_v30 = vsel %vm816_vm9, %v1660_v38, %v815_v60  ;;  %v928_v26 = vadd.f32 1e-08, %v849_v56  ;;  %v929_v11 = vadd.f32 1e-08, %v850_v58 }
  0xf4   : > { %v1280_v17 = vpop.eup %1279  ;;  %v820_v54 = vsel %vm818_vm13, %v819_v23, %v817_v30 }
  0xf5   : > { %v1282_v9 = vpop.eup %1281  ;;  %v496_v18 = vmul.f32 %v1280_v17, %v1668_v40  ;;  %v851_v59 = vmul.f32 %v1708_v19, %v820_v54  ;;  %1291 = vrcp.f32 %v928_v26 }
  0xf6   : > { %v1284_v20 = vpop.eup %1283  ;;  %v503_v41 = vmul.f32 %v1282_v9, %v1671_v27  ;;  %1293 = vrcp.f32 %v929_v11 }
  0xf7   : > { %v1286_v44 = vpop.eup %1285  ;;  %v822_v4 = vmul.f32 %v1284_v20, %v1652_v25  ;;  %v498_v47 = vsel %vm497_vm12, %v1668_v40, %v496_v18  ;;  %v833_v40 = vand.u32 2147483648, %v1662_v39  ;;  %v930_v23 = vadd.f32 1e-08, %v851_v59 }
  0xf8   : > { %v1288_v48 = vpop.eup %1287  ;;  %v829_v21 = vmul.f32 %v1286_v44, %v1662_v39  ;;  %v505_v55 = vsel %vm504_vm15, %v1671_v27, %v503_v41  ;;  %v501_v1 = vsel %vm499_vm1, %v500_v29, %v498_v47  ;;  %v852_v27 = vmul.f32 %v848_v16, %v820_v54 }
  0xf9   : > { %v1290_v57 = vpop.eup %1289  ;;  %v824_v38 = vsel %vm823_vm14, %v1652_v25, %v822_v4  ;;  %v510_v17 = vmul.f32 %v1288_v48, %v1676_v46  ;;  %v508_v60 = vsel %vm506_vm3, %v507_v53, %v505_v55  ;;  %v537_v9 = vmul.f32 %v1714_v24, %v501_v1 }
  0xfa   : > { %v831_v61 = vsel %vm830_vm2, %v1662_v39, %v829_v21  ;;  %v517_v7 = vmul.f32 %v1290_v57, %v1681_v49  ;;  %v538_v12 = vmul.f32 %v1718_v22, %v501_v1  ;;  %v827_v18 = vsel %vm825_vm0, %v826_v52, %v824_v38 }
  0xfb   : > { %v512_v20 = vsel %vm511_vm7, %v1676_v46, %v510_v17  ;;  %v539_v30 = vmul.f32 %v1714_v24, %v508_v60  ;;  %v521_v41 = vand.u32 2147483648, %v1681_v49  ;;  %v931_v44 = vadd.f32 1e-08, %v852_v27 }
  0xfc   : > { %v540_v29 = vmul.f32 %v1718_v22, %v508_v60  ;;  %v834_v45 = vsel %vm832_vm4, %v833_v40, %v831_v61  ;;  %v519_v25 = vsel %vm518_vm5, %v1681_v49, %v517_v7  ;;  %v616_v4 = vadd.f32 1e-08, %v537_v9 }
  0xfd   : > { %v853_v47 = vmul.f32 %v1708_v19, %v827_v18  ;;  %v515_v46 = vsel %vm513_vm8, %v514_v10, %v512_v20  ;;  %v617_v48 = vadd.f32 1e-08, %v538_v12  ;;  %v854_v52 = vmul.f32 %v848_v16, %v827_v18 }
  0xfe   : > { %1295 = vrcp.f32 %v930_v23  ;;  %v618_v53 = vadd.f32 1e-08, %v539_v30  ;;  %v855_v54 = vmul.f32 %v1708_v19, %v834_v45  ;;  %v522_v39 = vsel %vm520_vm6, %v521_v41, %v519_v25 }
  0xff   : > { %1297 = vrcp.f32 %v931_v44  ;;  %v619_v21 = vadd.f32 1e-08, %v540_v29  ;;  %v856_v55 = vmul.f32 %v848_v16, %v834_v45  ;;  %v541_v56 = vmul.f32 %v1714_v24, %v515_v46  ;;  %v1292_v59 = vpop.eup %1291 }
 0x100   : > { %1299 = vrcp.f32 %v616_v4  ;;  %v932_v57 = vadd.f32 1e-08, %v853_v47  ;;  %v542_v40 = vmul.f32 %v1718_v22, %v515_v46  ;;  %v933_v58 = vadd.f32 1e-08, %v854_v52  ;;  %v1294_v61 = vpop.eup %1293 }
 0x101   : > { %1301 = vrcp.f32 %v617_v48  ;;  %v543_v1 = vmul.f32 %v1714_v24, %v522_v39  ;;  %v934_v38 = vadd.f32 1e-08, %v855_v54  ;;  %v544_v19 = vmul.f32 %v1718_v22, %v522_v39 }
 0x102   : > { %1303 = vrcp.f32 %v618_v53  ;;  %v935_v49 = vadd.f32 1e-08, %v856_v55  ;;  %v620_v17 = vadd.f32 1e-08, %v541_v56  ;;  %v621_v16 = vadd.f32 1e-08, %v542_v40 }
 0x103   : > { %1305 = vrcp.f32 %v619_v21  ;;  %v622_v60 = vadd.f32 1e-08, %v543_v1  ;;  %v623_v9 = vadd.f32 1e-08, %v544_v19 }
 0x104   : > { %1307 = vrcp.f32 %v932_v57 }
 0x105   : > { %1309 = vrcp.f32 %v933_v58 }
 0x106   : > { %1311 = vrcp.f32 %v934_v38 }
 0x107   : > { %1313 = vrcp.f32 %v935_v49 }
 0x108   : > { %v1296_v24 = vpop.eup %1295  ;;  %1315 = vrcp.f32 %v620_v17 }
 0x109   : > { %v1298_v22 = vpop.eup %1297  ;;  %1317 = vrcp.f32 %v621_v16 }
 0x10a   : > { %v1300_v20 = vpop.eup %1299  ;;  %1319 = vrcp.f32 %v622_v60 }
 0x10b   : > { %v1302_v41 = vpop.eup %1301  ;;  %1321 = vrcp.f32 %v623_v9 }
 0x10c   : > { %v1304_v45 = vpop.eup %1303 }
 0x10d   : > { %v1306_v47 = vpop.eup %1305 }
 0x10e   : > { %v1308_v52 = vpop.eup %1307 }
 0x10f   : > { %v1310_v39 = vpop.eup %1309 }
 0x110   : > { %v1312_v56 = vpop.eup %1311 }
 0x111   : > { %v1314_v58 = vpop.eup %1313 }
 0x112   : > { %v1316_v17 = vpop.eup %1315 }
 0x125   : > { %v909_v27 = vpop.f32.mrb[0].mxu1 }
 0x126   : > { %v944_v7 = vmul.f32 %v1292_v59, %v909_v27  ;;  %v911_v26 = vpop.f32.mrb[1].mxu1 }
 0x127   : > { %v945_v10 = vmul.f32 %v1294_v61, %v911_v26  ;;  %v913_v11 = vpop.f32.mrb[2].mxu1  ;;  %v1318_v61 = vpop.eup %1317 }
 0x128   : > { %v946_v12 = vmul.f32 %v1296_v24, %v913_v11  ;;  %v915_v18 = vpop.f32.mrb[3].mxu1  ;;  %v952_v1 = vmax.f32 %v944_v7, 0.0 }
 0x129   : > { %v597_v23 = vpop.f32.mrb[0].mxu0  ;;  %v947_v30 = vmul.f32 %v1298_v22, %v915_v18  ;;  %v953_v16 = vmax.f32 %v945_v10, 0.0  ;;  %v1320_v18 = vpop.eup %1319 }
 0x12a   : > { %v632_v44 = vmul.f32 %v1300_v20, %v597_v23  ;;  %v599_v29 = vpop.f32.mrb[1].mxu0  ;;  %v954_v26 = vmax.f32 %v946_v12, 0.0 }
 0x12b   : > { %v633_v25 = vmul.f32 %v1302_v41, %v599_v29  ;;  %v601_v4 = vpop.f32.mrb[2].mxu0  ;;  %v955_v20 = vmax.f32 %v947_v30, 0.0 }
 0x12c   : > { %v634_v46 = vmul.f32 %v1304_v45, %v601_v4  ;;  %v603_v48 = vpop.f32.mrb[3].mxu0  ;;  %v1322_v45 = vpop.eup %1321  ;;  %v640_v4 = vmax.f32 %v632_v44, 0.0 }
 0x12d   : > { %v635_v53 = vmul.f32 %v1306_v47, %v603_v48  ;;  %v919_v54 = vpop.f32.mrb[4].mxu1 }
 0x12e   : > { %v948_v21 = vmul.f32 %v1308_v52, %v919_v54  ;;  %v921_v55 = vpop.f32.mrb[5].mxu1  ;;  %v641_v54 = vmax.f32 %v633_v25, 0.0 }
 0x12f   : > { %v949_v57 = vmul.f32 %v1310_v39, %v921_v55  ;;  %v923_v40 = vpop.f32.mrb[6].mxu1  ;;  %v642_v55 = vmax.f32 %v634_v46, 0.0 }
 0x130   : > { %v956_v38 = vmax.f32 %v948_v21, 0.0  ;;  %v950_v19 = vmul.f32 %v1312_v56, %v923_v40  ;;  %v925_v49 = vpop.f32.mrb[7].mxu1 }
 0x131   : > { %v957_v59 = vmax.f32 %v949_v57, 0.0  ;;  %v607_v27 = vpop.f32.mrb[4].mxu0  ;;  %v951_v60 = vmul.f32 %v1314_v58, %v925_v49  ;;  %v643_v58 = vmax.f32 %v635_v53, 0.0 }
 0x132   : > { %v960_v9 = vmax.f32 %v952_v1, %v956_v38  ;;  %v636_v24 = vmul.f32 %v1316_v17, %v607_v27  ;;  %v958_v11 = vmax.f32 %v950_v19, 0.0  ;;  %v609_v22 = vpop.f32.mrb[5].mxu0 }
 0x133   : > { %v969_v23 = vmax.f32 %v953_v16, %v957_v59  ;;  %v637_v41 = vmul.f32 %v1318_v61, %v609_v22  ;;  %v959_v29 = vmax.f32 %v951_v60, 0.0  ;;  %v611_v7 = vpop.f32.mrb[6].mxu0  ;;  %v1362_v60 = vmov 1983009808  }
 0x134   : > { %v644_v47 = vmax.f32 %v636_v24, 0.0  ;;  %v961_v48 = vmax.f32 %v954_v26, %v958_v11  ;;  %v638_v10 = vmul.f32 %v1320_v18, %v611_v7  ;;  %v613_v52 = vpop.f32.mrb[7].mxu0  ;;  %v982_v25 = vunpack.c.l.s4 %v1362_v60  ;;  %v1326_v60 = vld [vmem:[%s1431_s26 + $0x10] sm:$0xff] }
 0x135   : > { %v645_v39 = vmax.f32 %v637_v41, 0.0  ;;  %v970_v21 = vmax.f32 %v955_v20, %v959_v29  ;;  %v639_v12 = vmul.f32 %v1322_v45, %v613_v52 }
 0x136   : > { %v648_v56 = vmax.f32 %v640_v4, %v644_v47  ;;  %v962_v57 = vmax.f32 %v960_v9, %v961_v48  ;;  %v646_v40 = vmax.f32 %v638_v10, 0.0  ;;  %v983_v18 = vunpack.c.0.s8 %v982_v25  ;;  %v1327_v25 = vld [vmem:[%s1431_s26 + $0x18] sm:$0xff] }
 0x137   : > { %v657_v30 = vmax.f32 %v641_v54, %v645_v39  ;;  %v971_v1 = vmax.f32 %v969_v23, %v970_v21  ;;  %v647_v38 = vmax.f32 %v639_v12, 0.0 }
 0x138   : > { %v963_v19 = vrot.slane %v962_v57, 4  ;;  %v649_v49 = vmax.f32 %v642_v55, %v646_v40  ;;  %v986_v48 = vsub.s32 %v983_v18, %v1410_v2  ;;  %v1323_v40 = vld [vmem:[%s1417_s23] sm:$0xf] }
 0x139   : > { %v972_v17 = vrot.slane %v971_v1, 4  ;;  %v658_v44 = vmax.f32 %v643_v58, %v647_v38 }
 0x13a   : > { %v964_v16 = vmax.f32 %v962_v57, %v963_v19  ;;  %v650_v59 = vmax.f32 %v648_v56, %v649_v49 }
 0x13b   : > { %v973_v27 = vmax.f32 %v971_v1, %v972_v17  ;;  %v659_v61 = vmax.f32 %v657_v30, %v658_v44 }
 0x13c   : > { %v965_v26 = vrot.slane %v964_v16, 2  ;;  %v651_v24 = vrot.slane %v650_v59, 4 }
 0x13d   : > { %v974_v46 = vrot.slane %v973_v27, 2  ;;  %v660_v11 = vrot.slane %v659_v61, 4 }
 0x13e   : > { %v966_v9 = vmax.f32 %v964_v16, %v965_v26  ;;  %v652_v22 = vmax.f32 %v650_v59, %v651_v24  ;;  %v1324_v16 = vld [vmem:[%s1431_s26] sm:$0xff] }
 0x13f   : > { %v975_v53 = vmax.f32 %v973_v27, %v974_v46  ;;  %v661_v20 = vmax.f32 %v659_v61, %v660_v11  ;;  %v1325_v27 = vld [vmem:[%s1431_s26 + $0x8] sm:$0xff]  ;;  %v1328_v26 = vld [vmem:[%s1431_s26 + $0x20] sm:$0xff] }
 0x140   : > { %v967_v23 = vrot.slane %v966_v9, 1  ;;  %v653_v41 = vrot.slane %v652_v22, 2  ;;  %v1329_v46 = vld [vmem:[%s1431_s26 + $0x28] sm:$0xff] }
 0x141   : > { %v976_v29 = vrot.slane %v975_v53, 1  ;;  %v662_v7 = vrot.slane %v661_v20, 2 }
 0x142   : > { %v968_v45 = vmax.f32 %v966_v9, %v967_v23  ;;  %v654_v4 = vmax.f32 %v652_v22, %v653_v41  ;;  %v1330_v9 = vld [vmem:[%s1431_s26 + $0x30] sm:$0xff]  ;;  %v1333_v41 = vld [vmem:[%s1431_s26 + $0x48] sm:$0xff] }
 0x143   : > { %v977_v47 = vmax.f32 %v975_v53, %v976_v29  ;;  %v663_v10 = vmax.f32 %v661_v20, %v662_v7  ;;  %v1331_v53 = vld [vmem:[%s1431_s26 + $0x38] sm:$0xff]  ;;  %v1332_v20 = vld [vmem:[%s1431_s26 + $0x40] sm:$0xff]  ;;  %v1334_v7 = vld [vmem:[%s1431_s26 + $0x50] sm:$0xff] }
 0x144   : > { %v655_v52 = vrot.slane %v654_v4, 1 }
 0x145   : > { %v980_v54 = vcombine.low %v968_v45, %v977_v47  ;;  %v664_v39 = vrot.slane %v663_v10, 1 }
 0x146   : > { %v656_v21 = vmax.f32 %v654_v4, %v655_v52  ;;  %v1335_v4 = vld [vmem:[%s1431_s26 + $0x58] sm:$0xff] }
 0x147   : > { %v987_v12 = vrot.slane %v980_v54, %v986_v48  ;;  %v665_v55 = vmax.f32 %v663_v10, %v664_v39 }
 0x149   : > { %v988_v56 = vrot.slane %v987_v12, 7  ;;  %v993_v57 = vcombine.low %v656_v21, %v665_v55 }
 0x14b   : > { %v990_v58 = vsub.f32 %v1323_v40, %v988_v56  ;;  %v1000_v30 = vrot.slane %v993_v57, %v986_v48 }
 0x14d   : > { %v1001_v1 = vrot.slane %v1000_v30, 7 }
 0x14f   : > { %v1003_v2 = vadd.f32 %v1001_v1, %v990_v58 }
 0x151   : > { %v1004_v38 = vadd.f32 1.0, %v1003_v2 }
 0x153   : > { %v1009_v19 = vrot.slane %v1004_v38, %v1421_v5  ;;  %v1013_v49 = vrot.slane %v1004_v38, %v1424_v6 }
 0x155   : > { %v1783_v17 = vrot.slane %v1009_v19, %v1421_v5  ;;  %v1786_v44 = vrot.slane %v1013_v49, %v1421_v5 }
 0x157   : > { %v1024_v59 = vmul.f32 %v1324_v16, %v1783_v17  ;;  %v1025_v6 = vmul.f32 %v1325_v27, %v1786_v44  ;;  %v1026_v5 = vmul.f32 %v1326_v60, %v1783_v17  ;;  %v1027_v61 = vmul.f32 %v1327_v25, %v1786_v44 }
 0x158   : > { %v1028_v24 = vmul.f32 %v1328_v26, %v1783_v17  ;;  %v1029_v11 = vmul.f32 %v1329_v46, %v1786_v44  ;;  %v1030_v22 = vmul.f32 %v1330_v9, %v1783_v17  ;;  %v1031_v18 = vmul.f32 %v1331_v53, %v1786_v44 }
 0x159   : > { %v1032_v23 = vmul.f32 %v1332_v20, %v1783_v17  ;;  %v1033_v29 = vmul.f32 %v1333_v41, %v1786_v44  ;;  %v1034_v45 = vmul.f32 %v1334_v7, %v1783_v17  ;;  %v1035_v47 = vmul.f32 %v1335_v4, %v1786_v44  ;;  %1056 = vst [vmem:[%s1793_s10] sm:$0xff] %v1024_v59 }
 0x15a   : > { %1057 = vst [vmem:[%s1793_s10 + $0x8] sm:$0xff] %v1025_v6  ;;  %1058 = vst [vmem:[%s1793_s10 + $0x10] sm:$0xff] %v1026_v5  ;;  %v1036_v48 = vmul.f32 %v1783_v17, %v1496_v50  ;;  %v1037_v10 = vmul.f32 %v1786_v44, %v1482_v32  ;;  %v1038_v52 = vmul.f32 %v1783_v17, %v1499_v51 }
 0x15b   : > { %1059 = vst [vmem:[%s1793_s10 + $0x18] sm:$0xff] %v1027_v61  ;;  %v1039_v54 = vmul.f32 %v1786_v44, %v1485_v33  ;;  %1060 = vst [vmem:[%s1793_s10 + $0x20] sm:$0xff] %v1028_v24  ;;  %v1040_v50 = vmul.f32 %v1783_v17, %v1518_v14  ;;  %v1041_v32 = vmul.f32 %v1786_v44, %v1512_v8 }
 0x15c   : > { %1061 = vst [vmem:[%s1793_s10 + $0x28] sm:$0xff] %v1029_v11  ;;  %1062 = vst [vmem:[%s1793_s10 + $0x30] sm:$0xff] %v1030_v22  ;;  %v1042_v51 = vmul.f32 %v1783_v17, %v1521_v15  ;;  %v1043_v33 = vmul.f32 %v1786_v44, %v1515_v13  ;;  %v1044_v14 = vmul.f32 %v1783_v17, %v1552_v62 }
 0x15d   : > { %1063 = vst [vmem:[%s1793_s10 + $0x38] sm:$0xff] %v1031_v18  ;;  %1064 = vst [vmem:[%s1793_s10 + $0x40] sm:$0xff] %v1032_v23  ;;  %v1045_v8 = vmul.f32 %v1786_v44, %v1534_v42  ;;  %v1046_v15 = vmul.f32 %v1783_v17, %v1555_v63  ;;  %v1047_v13 = vmul.f32 %v1786_v44, %v1537_v43 }
 0x15e   : > { %1065 = vst [vmem:[%s1793_s10 + $0x48] sm:$0xff] %v1033_v29  ;;  %1066 = vst [vmem:[%s1793_s10 + $0x50] sm:$0xff] %v1034_v45  ;;  %v1048_v62 = vmul.f32 %v1783_v17, %v1574_v36  ;;  %v1049_v42 = vmul.f32 %v1786_v44, %v1568_v28  ;;  %v1050_v63 = vmul.f32 %v1783_v17, %v1577_v37 }
 0x15f   : > { %1067 = vst [vmem:[%s1793_s10 + $0x58] sm:$0xff] %v1035_v47  ;;  %1068 = vst [vmem:[%s1793_s10 + $0x60] sm:$0xff] %v1036_v48  ;;  %v1051_v43 = vmul.f32 %v1786_v44, %v1571_v35  ;;  %v1052_v28 = vmul.f32 %v1783_v17, %v1609_v31  ;;  %v1053_v36 = vmul.f32 %v1786_v44, %v1590_v0 }
 0x160   : > { %1069 = vst [vmem:[%s1793_s10 + $0x68] sm:$0xff] %v1037_v10  ;;  %1070 = vst [vmem:[%s1793_s10 + $0x70] sm:$0xff] %v1038_v52  ;;  %v1054_v37 = vmul.f32 %v1783_v17, %v1612_v34  ;;  %v1055_v35 = vmul.f32 %v1786_v44, %v1593_v3 }
 0x161   : > { %1071 = vst [vmem:[%s1793_s10 + $0x78] sm:$0xff] %v1039_v54  ;;  %1072 = vst [vmem:[%s1793_s10 + $0x80] sm:$0xff] %v1040_v50 }
 0x162   : > { %1073 = vst [vmem:[%s1793_s10 + $0x88] sm:$0xff] %v1041_v32  ;;  %1074 = vst [vmem:[%s1793_s10 + $0x90] sm:$0xff] %v1042_v51 }
 0x163   : > { %1075 = vst [vmem:[%s1793_s10 + $0x98] sm:$0xff] %v1043_v33  ;;  %1076 = vst [vmem:[%s1793_s10 + $0xa0] sm:$0xff] %v1044_v14 }
 0x164   : > { %1077 = vst [vmem:[%s1793_s10 + $0xa8] sm:$0xff] %v1045_v8  ;;  %1078 = vst [vmem:[%s1793_s10 + $0xb0] sm:$0xff] %v1046_v15 }
 0x165   : > { %1079 = vst [vmem:[%s1793_s10 + $0xb8] sm:$0xff] %v1047_v13  ;;  %1080 = vst [vmem:[%s1793_s10 + $0xc0] sm:$0xff] %v1048_v62 }
 0x166   : > { %1081 = vst [vmem:[%s1793_s10 + $0xc8] sm:$0xff] %v1049_v42  ;;  %1082 = vst [vmem:[%s1793_s10 + $0xd0] sm:$0xff] %v1050_v63 }
 0x167   : > { %1083 = vst [vmem:[%s1793_s10 + $0xd8] sm:$0xff] %v1051_v43  ;;  %1084 = vst [vmem:[%s1793_s10 + $0xe0] sm:$0xff] %v1052_v28 }
 0x168   : > { %1085 = vst [vmem:[%s1793_s10 + $0xe8] sm:$0xff] %v1053_v36  ;;  %1086 = vst [vmem:[%s1793_s10 + $0xf0] sm:$0xff] %v1054_v37 }
 0x169   : > { %1087 = vst [vmem:[%s1793_s10 + $0xf8] sm:$0xff] %v1055_v35 }
 0x16a PF: > { %s14_s17 = sadd.s32 1, %s1358_s17   ;;  %s1905_s15 = smov %s1354_s16 }
 0x16b   : > { %p11_p5 = scmp.ge.s32.totalorder %s14_s17, 4   ;;  %s1906_s16 = smov %s1908_s18 }
 0x16d   :  { %13 = sbr.rel (!%p11_p5) target bundleno = 2 (0x2), region = 75 }

</bundles_post_ra>
